<compile_context>
chip_gen: v7x
topology: tpu7x:2x2x1
jax: 0.10.0
libtpu: 0.0.40
codegen_flags: <defaults>
</compile_context>

<pallas_src>
import jax
import jax.numpy as jnp
from jax.experimental import pallas as pl
from jax.experimental.pallas import tpu as pltpu


def ranker_kernel(x1_ref, x2_ref, w_ref, out_ref):
    """x1_ref, x2_ref: [TB, C] feature tiles; w_ref: [1, C]; out_ref: [1, TB]."""
    # bias-free Linear  =>  fc(x1) - fc(x2) == fc(x1 - x2): one stream, one reduce.
    diff = x1_ref[...] - x2_ref[...]                  # [TB, C], native dtype (f32/bf16)
    prod = (diff * w_ref[...]).astype(jnp.float32)    # multiply narrow, accumulate f32
    r = jnp.sum(prod, axis=-1)                        # [TB]  f32 rank-estimate difference
    # Lane-dense store: the whole batch tile lands on the 128-wide lane axis.
    out_ref[...] = jax.nn.sigmoid(r)[None, :]         # [1, TB]


def _round_up(x: int, m: int) -> int:
    return ((x + m - 1) // m) * m


def _vmem_limit_bytes() -> int:
    """Per-generation VMEM limit: ~70% of physical capacity.
    v7x (64 MiB/TC) -> ~44.8 MiB; v5e/v6e (128 MiB) -> ~89 MiB; both are well
    above the 16/32 MiB scoped defaults without risking compile-time OOM."""
    try:
        phys = int(pltpu.get_tpu_info().vmem_capacity_bytes)
    except Exception:  # pragma: no cover - conservative fallback (v7x per-core)
        phys = 64 * 1024 * 1024
    return int(phys * 0.7)


def _choose_batch_tile(B: int, C: int, itemsize: int, tile_budget_bytes: int,
                       n_buffers: int = 2) -> int:
    """Largest useful batch tile given the VMEM budget for the two pipelined
    feature inputs (n_buffers deep each).  Small batches get a single exact
    tile (no waste, no ragged block); large batches keep >= ~4 grid steps so
    v7x megacore sharding and DMA/compute overlap still have work to split."""
    bytes_per_row = 2 * n_buffers * C * itemsize           # the two streamed inputs
    cap = (tile_budget_bytes // bytes_per_row) // 128 * 128
    cap = max(128, min(cap, 4096))                         # diminishing returns past ~4k rows
    if B <= cap:
        # Aim for ~4 grid steps when the batch allows it, never exceed what B needs.
        tb = max(128, _round_up(pl.cdiv(B, 4), 128))
        tb = min(tb, cap)
        if tb >= B:
            return B                                       # one exact tile covers the batch
        return tb
    return cap


def ranker_forward(x1_feat, x2_feat, fc_weight):
    """posterior = sigmoid(fc(x1_feat) - fc(x2_feat)), fc = Linear(C -> 1, bias=False).

    x1_feat, x2_feat: [B, C] extracted features (f32 or bf16); fc_weight: [1, C].
    Returns [B, 1] float32 posteriors.
    """
    B, C = x1_feat.shape
    assert x2_feat.shape == (B, C)
    assert fc_weight.shape == (1, C)

    dtype = x1_feat.dtype
    x2_feat = x2_feat.astype(dtype)
    fc_weight = fc_weight.astype(dtype)

    itemsize = jnp.dtype(dtype).itemsize
    vmem_limit = _vmem_limit_bytes()
    # Leave headroom for the resident weight, output buffers and compiler scratch.
    tile_budget = max(vmem_limit - (2 << 20), 8 << 20)
    TB = _choose_batch_tile(B, C, itemsize, tile_budget)

    n_tiles = pl.cdiv(B, TB)
    # Only the (tiny) output is padded so its blocks tile it exactly; the big
    # [B, C] inputs are never padded -- the ragged last block is handled by
    # Pallas and the garbage tail rows are sliced off below.
    B_pad = n_tiles * TB

    out = pl.pallas_call(
        ranker_kernel,
        out_shape=jax.ShapeDtypeStruct((1, B_pad), jnp.float32),
        grid_spec=pltpu.PrefetchScalarGridSpec(
            num_scalar_prefetch=0,
            grid=(n_tiles,),
            in_specs=[
                pl.BlockSpec((TB, C), lambda i: (i, 0)),   # x1 tile (pipelined)
                pl.BlockSpec((TB, C), lambda i: (i, 0)),   # x2 tile (pipelined)
                pl.BlockSpec((1, C), lambda i: (0, 0)),    # fc weight (resident)
            ],
            out_specs=pl.BlockSpec((1, TB), lambda i: (0, i)),
        ),
        compiler_params=pltpu.CompilerParams(
            # Independent batch tiles: shard grid steps across both TensorCores
            # on v7x; no-op on single-TC v5e/v6e.
            dimension_semantics=("parallel",),
            vmem_limit_bytes=vmem_limit,
        ),
    )(x1_feat, x2_feat, fc_weight)

    return out[0, :B].reshape(B, 1)


def reference_forward(x1_feat, x2_feat, fc_weight):
    x1 = x1_feat.astype(jnp.float32)
    x2 = x2_feat.astype(jnp.float32)
    w = fc_weight.astype(jnp.float32)
    return jax.nn.sigmoid(x1 @ w.T - x2 @ w.T)


if __name__ == "__main__":
    key = jax.random.PRNGKey(0)
    k1, k2, k3, k4, k5 = jax.random.split(key, 5)

    # --- small case matching the module (single exact tile, no padding) -------
    B, C = 8, 256          # C ~ ExtractorResNet.out_channels (synthetic)
    x1 = jax.random.normal(k1, (B, C), dtype=jnp.float32)
    x2 = jax.random.normal(k2, (B, C), dtype=jnp.float32)
    bound = 1.0 / jnp.sqrt(jnp.float32(C))
    fc_w = jax.random.uniform(k3, (1, C), dtype=jnp.float32,
                              minval=-bound, maxval=bound)

    out = jax.block_until_ready(ranker_forward(x1, x2, fc_w))
    ref = reference_forward(x1, x2, fc_w)
    assert out.shape == (B, 1)
    assert jnp.allclose(out, ref, atol=1e-5, rtol=1e-5)

    # --- multi-tile case with a ragged last block (no host-side input pad) ----
    B2, C2 = 260, 64
    y1 = jax.random.normal(k4, (B2, C2), dtype=jnp.float32)
    y2 = jax.random.normal(k5, (B2, C2), dtype=jnp.float32)
    bound2 = 1.0 / jnp.sqrt(jnp.float32(C2))
    fc_w2 = jax.random.uniform(k3, (1, C2), dtype=jnp.float32,
                               minval=-bound2, maxval=bound2)

    out2 = jax.block_until_ready(ranker_forward(y1, y2, fc_w2))
    ref2 = reference_forward(y1, y2, fc_w2)
    assert out2.shape == (B2, 1)
    assert jnp.allclose(out2, ref2, atol=1e-5, rtol=1e-5)

    # --- bf16 feature path (halved HBM traffic; f32 accumulation in-kernel) ---
    x1_bf, x2_bf = x1.astype(jnp.bfloat16), x2.astype(jnp.bfloat16)
    out_bf = jax.block_until_ready(ranker_forward(x1_bf, x2_bf, fc_w))
    ref_bf = reference_forward(x1_bf, x2_bf, fc_w.astype(jnp.bfloat16))
    assert out_bf.shape == (B, 1)
    assert jnp.allclose(out_bf, ref_bf, atol=1e-2, rtol=1e-2)

    print("KERNEL_OK")
</pallas_src>

<mosaic_0001>
module attributes {stable_mosaic.version = 11 : i64} {
  func.func @ranker_kernel(%arg0: i32, %arg1: memref<8x256xf32, #tpu.memory_space<vmem>>, %arg2: memref<8x256xf32, #tpu.memory_space<vmem>>, %arg3: memref<1x256xf32, #tpu.memory_space<vmem>>, %arg4: memref<1x8xf32, #tpu.memory_space<vmem>>) attributes {dimension_semantics = [#tpu.dimension_semantics<parallel>], iteration_bounds = array<i64: 1>, scalar_prefetch = 0 : i64, scratch_operands = 0 : i64, tpu.core_type = #tpu.core_type<tc>, window_params = [{transform_indices = @transform_0, window_bounds = array<i64: 8, 256>}, {transform_indices = @transform_1, window_bounds = array<i64: 8, 256>}, {pipeline_mode = #tpu.pipeline_mode<synchronous>, transform_indices = @transform_2, window_bounds = array<i64: 1, 256>}, {transform_indices = @transform_3, window_bounds = array<i64: 1, 8>}]} {
    %c0 = arith.constant 0 : index
    %c0_0 = arith.constant 0 : index
    %0 = vector.load %arg1[%c0, %c0_0] : memref<8x256xf32, #tpu.memory_space<vmem>>, vector<8x256xf32>
    %c0_1 = arith.constant 0 : index
    %c0_2 = arith.constant 0 : index
    %1 = vector.load %arg2[%c0_1, %c0_2] : memref<8x256xf32, #tpu.memory_space<vmem>>, vector<8x256xf32>
    %2 = arith.subf %0, %1 : vector<8x256xf32>
    %c0_3 = arith.constant 0 : index
    %c0_4 = arith.constant 0 : index
    %3 = vector.load %arg3[%c0_3, %c0_4] : memref<1x256xf32, #tpu.memory_space<vmem>>, vector<1x256xf32>
    %4 = vector.broadcast %3 : vector<1x256xf32> to vector<8x256xf32>
    %5 = arith.mulf %2, %4 : vector<8x256xf32>
    %cst = arith.constant dense<0.000000e+00> : vector<8xf32>
    %6 = vector.multi_reduction <add>, %5, %cst [1] : vector<8x256xf32> to vector<8xf32>
    %7 = arith.negf %6 : vector<8xf32>
    %8 = math.exp %7 : vector<8xf32>
    %cst_5 = arith.constant 1.000000e+00 : f32
    %9 = vector.broadcast %cst_5 : f32 to vector<8xf32>
    %10 = arith.addf %9, %8 : vector<8xf32>
    %11 = arith.divf %9, %10 : vector<8xf32>
    %12 = vector.shape_cast %11 : vector<8xf32> to vector<1x8xf32>
    %c0_6 = arith.constant 0 : index
    %c0_7 = arith.constant 0 : index
    %13 = vector.load %arg4[%c0_6, %c0_7] : memref<1x8xf32, #tpu.memory_space<vmem>>, vector<1x8xf32>
    tpu.vector_store %arg4[%c0_6, %c0_7], %12 {strides = array<i32>} : memref<1x8xf32, #tpu.memory_space<vmem>>, vector<1x8xf32>,
    return
  }
  func.func @transform_0(%arg0: i32) -> (i32, i32) {
    %c0_i32 = arith.constant 0 : i32
    %c0_i32_0 = arith.constant 0 : i32
    return %arg0, %c0_i32 : i32, i32
  }
  func.func @transform_1(%arg0: i32) -> (i32, i32) {
    %c0_i32 = arith.constant 0 : i32
    %c0_i32_0 = arith.constant 0 : i32
    return %arg0, %c0_i32 : i32, i32
  }
  func.func @transform_2(%arg0: i32) -> (i32, i32) {
    %c0_i32 = arith.constant 0 : i32
    %c0_i32_0 = arith.constant 0 : i32
    %c0_i32_1 = arith.constant 0 : i32
    return %c0_i32, %c0_i32_0 : i32, i32
  }
  func.func @transform_3(%arg0: i32) -> (i32, i32) {
    %c0_i32 = arith.constant 0 : i32
    %c0_i32_0 = arith.constant 0 : i32
    return %c0_i32, %arg0 : i32, i32
  }
}

</mosaic_0001>

<bundles_post_ra>
// kernel: tpu_custom_call.1
= control target key start
LH: loop header
LB: loop body
LE: loop exit
PB: predicated region body
PF: predicated region fallthrough
CT: control target
= control target key end

     0   :  { %8 = vsyncpa [#allocation3], 0  ;;  %s236_s0 = inlined_call_operand.hbm [shape: f32[8,256], index: 0, kind: input, shape index: {}]   ;;  %s237_s1 = inlined_call_operand.hbm [shape: f32[8,256], index: 1, kind: input, shape index: {}]   ;;  %s238_s2 = inlined_call_operand.vmem [shape: f32[1,256], index: 2, kind: input, shape index: {}]   ;;  %s239_s3 = inlined_call_operand.hbm [shape: f32[1,8], index: 3, kind: output, shape index: {}]  }
   0x1   :  { %9 = vsyncpa [#allocation6], 0 }
   0x2   :  { %10 = vsyncpa [#allocation4], 0  ;;  %s174_s12 = smov [#allocation2]   ;;  %s175_s14 = smov [#allocation5]  }
   0x3   :  { %s17_s13 = sshll.u32 %s174_s12, 4  ;;  %s27_s15 = sshll.u32 %s175_s14, 4  ;;  %s18_s13 = int_to_ptr.vmem [resolvable:$true] %s17_s13  ;;  %s28_s15 = int_to_ptr.vmem [resolvable:$true] %s27_s15 }
   0x4   :  { %s102_s18 = scalar_lea.hbm %s236_s0, 256 }
   0x5   :  { %p103_p0 = scmp.ne.s32.totalorder %s236_s0, %s102_s18  ;;  %p106_p1 = scmp.lt.u32.totalorder %s102_s18, %s236_s0 }
   0x7   :  { %p108_p2 = pnand %p106_p1, %p103_p0 }
   0x9   :  { %111 = shalt.err (!%p108_p2)
}
   0xa   :  { %s112_s23 = scalar_lea.vmem %s18_s13, 256  ;;  %p117_p4 = scmp.lt.s32.totalorder %s18_s13, %s18_s13 }
   0xb   :  { %p113_p3 = scmp.ne.s32.totalorder %s18_s13, %s112_s23  ;;  %p118_p5 = scmp.lt.s32.totalorder %s112_s23, %s112_s23 }
   0xd   :  { %p119_p6 = por %p118_p5, %p117_p4 }
   0xf   :  { %p120_p7 = pnand %p119_p6, %p113_p3 }
  0x11   :  { %123 = shalt.err (!%p120_p7)
}
  0x12   :  { %20 = dma.hbm_to_vmem [thread:$0]  %s236_s0, 256, %s18_s13, [#allocation3]  }
  0x13   :  { %s124_s28 = scalar_lea.hbm %s237_s1, 256 }
  0x14   :  { %p125_p8 = scmp.ne.s32.totalorder %s237_s1, %s124_s28  ;;  %p128_p9 = scmp.lt.u32.totalorder %s124_s28, %s237_s1 }
  0x16   :  { %p130_p10 = pnand %p128_p9, %p125_p8 }
  0x18   :  { %133 = shalt.err (!%p130_p10)
}
  0x19   :  { %s134_s6 = scalar_lea.vmem %s28_s15, 256  ;;  %p139_p12 = scmp.lt.s32.totalorder %s28_s15, %s28_s15 }
  0x1a   :  { %p135_p11 = scmp.ne.s32.totalorder %s28_s15, %s134_s6  ;;  %p140_p13 = scmp.lt.s32.totalorder %s134_s6, %s134_s6 }
  0x1c   :  { %p141_p0 = por %p140_p13, %p139_p12 }
  0x1e   :  { %p142_p1 = pnand %p141_p0, %p135_p11 }
  0x20   :  { %145 = shalt.err (!%p142_p1)
}
  0x21   :  { %30 = dma.hbm_to_vmem [thread:$0]  %s237_s1, 256, %s28_s15, [#allocation6]  }
  0x22   :  { %168 = dma.done.wait [#allocation3], 256  }
  0x23   :  { %169 = vsyncadd [#allocation3], 4294967040 }
  0x24   :  { %170 = dma.done.wait [#allocation6], 256  }
  0x25   :  { %171 = vsyncadd [#allocation6], 4294967040  ;;  %v47_v0 = vlaneseq  ;;  %v39_v4 = vld [vmem:[#allocation2] sm:$0xff]  ;;  %v40_v5 = vld [vmem:[#allocation2 + $0x8] sm:$0xff]  ;;  %s176_s1 = smov [#allocation7]   ;;  %vm76_vm0 = vcmask 57344  }
  0x26   :  { %v41_v6 = vld [vmem:[#allocation5] sm:$0xff]  ;;  %v42_v7 = vld [vmem:[#allocation5 + $0x8] sm:$0xff]  ;;  %v45_v9 = vld [vmem:[%s238_s2] sm:$0x3]  ;;  %s84_s10 = sshll.u32 %s176_s1, 4  ;;  %s85_s10 = int_to_ptr.vmem [resolvable:$true] %s84_s10 }
  0x27   :  { %v48_v1 = vshrl.u32 %v47_v0, 7  ;;  %v43_v8 = vsub.f32 %v39_v4, %v41_v6  ;;  %v44_v10 = vsub.f32 %v40_v5, %v42_v7  ;;  %v70_v16 = vand.u32 127, %v47_v0  ;;  %s146_s2 = scalar_lea.vmem %s85_s10, 16  ;;  %s150_s11 = scalar_lea.vmem %s85_s10, 32 }
  0x28   :  { %p147_p2 = scmp.ne.s32.totalorder %s85_s10, %s146_s2  ;;  %p151_p3 = scmp.lt.s32.totalorder %s85_s10, %s85_s10 }
  0x29   :  { %v49_v2 = vsub.s32 0, %v48_v1  ;;  %v53_v3 = vsub.s32 1, %v48_v1  ;;  %v73_v17 = vsub.s32 %v70_v16, %v48_v1  ;;  %p152_p4 = scmp.lt.s32.totalorder %s150_s11, %s146_s2 }
  0x2b   :  { %v50_v11 = vrot.slane %v45_v9, %v49_v2  ;;  %v54_v12 = vrot.slane %v45_v9, %v53_v3  ;;  %p153_p5 = por %p152_p4, %p151_p3 }
  0x2d   :  { %v57_v13 = vmul.f32 %v50_v11, %v43_v8  ;;  %v58_v14 = vmul.f32 %v54_v12, %v44_v10  ;;  %p154_p6 = pnand %p153_p5, %p147_p2 }
  0x2f   :  { %v59_v15 = vadd.f32 %v58_v14, %v57_v13 }
  0x31   :  { %60 = vadd.xlane.f32.xlu0 %v59_v15 }
  0xbe   :  { %v61_v18 = vpop.xlane.xlu0 %60 }
  0xbf   :  { %v94_v19 = vmul.f32 -1.442695, %v61_v18 }
  0xc1   :  { %98 = vpow2.f32 %v94_v19 }
  0xcb   :  { %v99_v20 = vpop.eup %98 }
  0xcc   :  { %v65_v21 = vadd.f32 1.0, %v99_v20 }
  0xce   :  { %100 = vrcp.f32 %v65_v21 }
  0xd8   :  { %v101_v22 = vpop.eup %100 }
  0xd9   :  { %v74_v23 = vrot.slane %v101_v22, %v73_v17 }
  0xdb   :  { %77 = vst.msk [vmem:[#allocation7] sm:$0x1] %vm76_vm0, %v74_v23 }
  0xdc   :  { %157 = shalt.err (!%p154_p6)
}
  0xdd   :  { %s158_s14 = scalar_lea.hbm %s239_s3, 16 }
  0xde   :  { %p159_p7 = scmp.ne.s32.totalorder %s239_s3, %s158_s14  ;;  %p162_p8 = scmp.lt.u32.totalorder %s158_s14, %s239_s3 }
  0xe0   :  { %p164_p9 = pnand %p162_p8, %p159_p7 }
  0xe2   :  { %167 = shalt.err (!%p164_p9)
}
  0xe3   :  { %87 = dma.vmem_to_hbm [thread:$0]  %s85_s10, 16, %s239_s3, [#allocation4]  }
  0xe4   :  { %172 = dma.done.wait [#allocation4], 16  }
  0xe5   :  { %173 = vsyncadd [#allocation4], 4294967280 }
  0xe6   :  { %91 = vsyncpa [#allocation3], 1 }
  0xe7   :  { %92 = vsyncpa [#allocation6], 1 }
  0xe8   :  { %93 = vsyncpa [#allocation4], 1 }

</bundles_post_ra>
